<compile_context>
chip_gen: v7x
topology: tpu7x:2x2x1
jax: 0.10.0
libtpu: 0.0.40
codegen_flags: <defaults>
</compile_context>

<pallas_src>
import functools

import jax
import jax.numpy as jnp
from jax.experimental import pallas as pl
from jax.experimental.pallas import tpu as pltpu

LANE = 128       # TPU lane width
HIDDEN = 128     # feature width (nn.Linear(state_dim, 128))
STREAM_H = 64    # per-stream hidden width


def dueling_dqn_kernel(x_ref, w1_ref, b1_ref, wva_ref, bva_ref, w2_ref, b2_ref,
                       q_ref, *, action_dim):
    # feature = ReLU(x @ W1 + b1)                          -> (TB, 128)
    feat = jnp.dot(x_ref[...], w1_ref[...], preferred_element_type=jnp.float32)
    feat = jnp.maximum(feat + b1_ref[...], 0.0)

    # fused stream hidden: [value_hidden | adv_hidden]     -> (TB, 128)
    h = jnp.dot(feat, wva_ref[...], preferred_element_type=jnp.float32)
    h = jnp.maximum(h + bva_ref[...], 0.0)

    # fused block-diagonal output:
    #   column 0      = value
    #   columns 1..A  = advantages
    #   columns A+1.. = exact zeros (zero weights + zero bias)
    va = jnp.dot(h, w2_ref[...], preferred_element_type=jnp.float32) + b2_ref[...]

    value = va[:, 0:1]                                     # (TB, 1)
    adv_sum = jnp.sum(va, axis=1, keepdims=True) - value   # padded lanes contribute 0
    adv_mean = adv_sum * (1.0 / action_dim)

    # Lane-dense store; real q-values live in columns 1..A (sliced in wrapper).
    q_ref[...] = (va + (value - adv_mean)).astype(q_ref.dtype)


def _fuse_params(params, state_dim, action_dim, dtype=jnp.float32):
    """One-time wrapper-side fusion / zero-padding of the raw Linear params."""
    sp = LANE * pl.cdiv(state_dim, LANE)   # padded state_dim (>= 128)

    # Layer 1: zero-pad extra K rows so padded x columns contribute nothing.
    w1 = jnp.zeros((sp, HIDDEN), dtype).at[:state_dim, :].set(params["w1"])
    b1 = params["b1"].reshape(1, HIDDEN).astype(dtype)

    # Fused stream hidden layer: [Wv1 | Wa1] -> (128, 128).
    wva = jnp.concatenate([params["wv1"], params["wa1"]], axis=1).astype(dtype)
    bva = jnp.concatenate([params["bv1"], params["ba1"]], axis=1).reshape(1, HIDDEN).astype(dtype)

    # Fused block-diagonal output layer -> (128, 128), lane-dense.
    w2 = jnp.zeros((HIDDEN, LANE), dtype)
    w2 = w2.at[:STREAM_H, 0:1].set(params["wv2"])
    w2 = w2.at[STREAM_H:, 1:1 + action_dim].set(params["wa2"])
    b2 = jnp.zeros((1, LANE), dtype)
    b2 = b2.at[0, 0:1].set(params["bv2"][0])
    b2 = b2.at[0, 1:1 + action_dim].set(params["ba2"][0])

    return w1, b1, wva, bva, w2, b2


def dueling_dqn_forward(x, params, *, tb_max=512):
    B, state_dim = x.shape
    action_dim = params["wa2"].shape[1]
    assert action_dim + 1 <= LANE, "action_dim must fit the 128-lane output slab"

    w1, b1, wva, bva, w2, b2 = _fuse_params(params, state_dim, action_dim)
    sp = w1.shape[0]

    # Batch tile: multiple of 8 sublanes, capped at tb_max; pad batch to it.
    tb = tb_max if B >= tb_max else 8 * pl.cdiv(B, 8)
    b_pad = tb * pl.cdiv(B, tb)
    x_pad = jnp.zeros((b_pad, sp), jnp.float32).at[:B, :state_dim].set(x)

    grid = (b_pad // tb,)

    def fixed(shape):
        return pl.BlockSpec(shape, lambda i: (0,) * len(shape))

    q_pad = pl.pallas_call(
        functools.partial(dueling_dqn_kernel, action_dim=action_dim),
        out_shape=jax.ShapeDtypeStruct((b_pad, LANE), jnp.float32),
        grid_spec=pltpu.PrefetchScalarGridSpec(
            num_scalar_prefetch=0,
            grid=grid,
            in_specs=[
                pl.BlockSpec((tb, sp), lambda i: (i, 0)),   # x tile
                fixed((sp, HIDDEN)),                        # W1      (resident)
                fixed((1, HIDDEN)),                         # b1      (resident)
                fixed((HIDDEN, HIDDEN)),                    # [Wv1|Wa1]
                fixed((1, HIDDEN)),                         # [bv1|ba1]
                fixed((HIDDEN, LANE)),                      # blockdiag(Wv2, Wa2)
                fixed((1, LANE)),                           # fused output bias
            ],
            out_specs=pl.BlockSpec((tb, LANE), lambda i: (i, 0)),
        ),
        compiler_params=pltpu.CompilerParams(
            dimension_semantics=("parallel",)),
    )(x_pad, w1, b1, wva, bva, w2, b2)

    # Columns 1..A hold the dueling q-values; drop batch padding.
    return q_pad[:B, 1:1 + action_dim]


def init_params(key, state_dim, action_dim):
    """Deterministic init mimicking PyTorch's default Linear init
    (uniform in [-1/sqrt(fan_in), 1/sqrt(fan_in)])."""
    def linear(key, fan_in, fan_out):
        kw, kb = jax.random.split(key)
        bound = 1.0 / jnp.sqrt(jnp.float32(fan_in))
        w = jax.random.uniform(kw, (fan_in, fan_out), jnp.float32, -bound, bound)
        b = jax.random.uniform(kb, (1, fan_out), jnp.float32, -bound, bound)
        return w, b

    keys = jax.random.split(key, 5)
    w1, b1 = linear(keys[0], state_dim, HIDDEN)
    wv1, bv1 = linear(keys[1], HIDDEN, STREAM_H)
    wv2, bv2 = linear(keys[2], STREAM_H, 1)
    wa1, ba1 = linear(keys[3], HIDDEN, STREAM_H)
    wa2, ba2 = linear(keys[4], STREAM_H, action_dim)
    return dict(w1=w1, b1=b1,
                wv1=wv1, bv1=bv1, wv2=wv2, bv2=bv2,
                wa1=wa1, ba1=ba1, wa2=wa2, ba2=ba2)


def reference_forward(x, p):
    feat = jnp.maximum(x @ p["w1"] + p["b1"], 0.0)
    vh = jnp.maximum(feat @ p["wv1"] + p["bv1"], 0.0)
    values = vh @ p["wv2"] + p["bv2"]
    ah = jnp.maximum(feat @ p["wa1"] + p["ba1"], 0.0)
    adv = ah @ p["wa2"] + p["ba2"]
    return values + (adv - adv.mean(axis=1, keepdims=True))


if __name__ == "__main__":
    batch, state_dim, action_dim = 2, 8, 4

    key = jax.random.PRNGKey(0)
    k_x, k_p = jax.random.split(key)
    x = jax.random.normal(k_x, (batch, state_dim), jnp.float32)
    params = init_params(k_p, state_dim, action_dim)

    q = dueling_dqn_forward(x, params)
    jax.block_until_ready(q)

    q_ref = reference_forward(x, params)
    assert q.shape == (batch, action_dim)
    assert jnp.allclose(q, q_ref, atol=1e-5, rtol=1e-5), "mismatch vs reference"

    print("KERNEL_OK")
</pallas_src>

<mosaic_0001>
module attributes {stable_mosaic.version = 11 : i64} {
  func.func @dueling_dqn_kernel(%arg0: i32, %arg1: memref<8x128xf32, #tpu.memory_space<vmem>>, %arg2: memref<128x128xf32, #tpu.memory_space<vmem>>, %arg3: memref<1x128xf32, #tpu.memory_space<vmem>>, %arg4: memref<128x128xf32, #tpu.memory_space<vmem>>, %arg5: memref<1x128xf32, #tpu.memory_space<vmem>>, %arg6: memref<128x128xf32, #tpu.memory_space<vmem>>, %arg7: memref<1x128xf32, #tpu.memory_space<vmem>>, %arg8: memref<8x128xf32, #tpu.memory_space<vmem>>) attributes {dimension_semantics = [#tpu.dimension_semantics<parallel>], iteration_bounds = array<i64: 1>, scalar_prefetch = 0 : i64, scratch_operands = 0 : i64, tpu.core_type = #tpu.core_type<tc>, window_params = [{transform_indices = @transform_0, window_bounds = array<i64: 8, 128>}, {pipeline_mode = #tpu.pipeline_mode<synchronous>, transform_indices = @transform_1, window_bounds = array<i64: 128, 128>}, {pipeline_mode = #tpu.pipeline_mode<synchronous>, transform_indices = @transform_2, window_bounds = array<i64: 1, 128>}, {pipeline_mode = #tpu.pipeline_mode<synchronous>, transform_indices = @transform_3, window_bounds = array<i64: 128, 128>}, {pipeline_mode = #tpu.pipeline_mode<synchronous>, transform_indices = @transform_4, window_bounds = array<i64: 1, 128>}, {pipeline_mode = #tpu.pipeline_mode<synchronous>, transform_indices = @transform_5, window_bounds = array<i64: 128, 128>}, {pipeline_mode = #tpu.pipeline_mode<synchronous>, transform_indices = @transform_6, window_bounds = array<i64: 1, 128>}, {transform_indices = @transform_7, window_bounds = array<i64: 8, 128>}]} {
    %c0 = arith.constant 0 : index
    %c0_0 = arith.constant 0 : index
    %0 = vector.load %arg1[%c0, %c0_0] : memref<8x128xf32, #tpu.memory_space<vmem>>, vector<8x128xf32>
    %c0_1 = arith.constant 0 : index
    %c0_2 = arith.constant 0 : index
    %1 = vector.load %arg2[%c0_1, %c0_2] : memref<128x128xf32, #tpu.memory_space<vmem>>, vector<128x128xf32>
    %cst = arith.constant dense<0.000000e+00> : vector<8x128xf32>
    %2 = tpu.matmul %0, %1, %cst {dimension_numbers = #tpu.dot_dimension_numbers<[1], [0], [0], [1], [0, 0, 1, 1], [], []>} : vector<8x128xf32>, vector<128x128xf32>, vector<8x128xf32> -> vector<8x128xf32>
    %c0_3 = arith.constant 0 : index
    %c0_4 = arith.constant 0 : index
    %3 = vector.load %arg3[%c0_3, %c0_4] : memref<1x128xf32, #tpu.memory_space<vmem>>, vector<1x128xf32>
    %4 = vector.broadcast %3 : vector<1x128xf32> to vector<8x128xf32>
    %5 = arith.addf %2, %4 : vector<8x128xf32>
    %cst_5 = arith.constant 0.000000e+00 : f32
    %6 = vector.broadcast %cst_5 : f32 to vector<8x128xf32>
    %7 = arith.maximumf %5, %6 : vector<8x128xf32>
    %c0_6 = arith.constant 0 : index
    %c0_7 = arith.constant 0 : index
    %8 = vector.load %arg4[%c0_6, %c0_7] : memref<128x128xf32, #tpu.memory_space<vmem>>, vector<128x128xf32>
    %cst_8 = arith.constant dense<0.000000e+00> : vector<8x128xf32>
    %9 = tpu.matmul %7, %8, %cst_8 {dimension_numbers = #tpu.dot_dimension_numbers<[1], [0], [0], [1], [0, 0, 1, 1], [], []>} : vector<8x128xf32>, vector<128x128xf32>, vector<8x128xf32> -> vector<8x128xf32>
    %c0_9 = arith.constant 0 : index
    %c0_10 = arith.constant 0 : index
    %10 = vector.load %arg5[%c0_9, %c0_10] : memref<1x128xf32, #tpu.memory_space<vmem>>, vector<1x128xf32>
    %11 = vector.broadcast %10 : vector<1x128xf32> to vector<8x128xf32>
    %12 = arith.addf %9, %11 : vector<8x128xf32>
    %cst_11 = arith.constant 0.000000e+00 : f32
    %13 = vector.broadcast %cst_11 : f32 to vector<8x128xf32>
    %14 = arith.maximumf %12, %13 : vector<8x128xf32>
    %c0_12 = arith.constant 0 : index
    %c0_13 = arith.constant 0 : index
    %15 = vector.load %arg6[%c0_12, %c0_13] : memref<128x128xf32, #tpu.memory_space<vmem>>, vector<128x128xf32>
    %cst_14 = arith.constant dense<0.000000e+00> : vector<8x128xf32>
    %16 = tpu.matmul %14, %15, %cst_14 {dimension_numbers = #tpu.dot_dimension_numbers<[1], [0], [0], [1], [0, 0, 1, 1], [], []>} : vector<8x128xf32>, vector<128x128xf32>, vector<8x128xf32> -> vector<8x128xf32>
    %c0_15 = arith.constant 0 : index
    %c0_16 = arith.constant 0 : index
    %17 = vector.load %arg7[%c0_15, %c0_16] : memref<1x128xf32, #tpu.memory_space<vmem>>, vector<1x128xf32>
    %18 = vector.broadcast %17 : vector<1x128xf32> to vector<8x128xf32>
    %19 = arith.addf %16, %18 : vector<8x128xf32>
    %20 = vector.extract_strided_slice %19 {offsets = [0, 0], sizes = [8, 1], strides = [1, 1]} : vector<8x128xf32> to vector<8x1xf32>
    %cst_17 = arith.constant dense<0.000000e+00> : vector<8xf32>
    %21 = vector.multi_reduction <add>, %19, %cst_17 [1] : vector<8x128xf32> to vector<8xf32>
    %22 = vector.shape_cast %21 : vector<8xf32> to vector<8x1xf32>
    %23 = arith.subf %22, %20 : vector<8x1xf32>
    %cst_18 = arith.constant 2.500000e-01 : f32
    %24 = vector.broadcast %cst_18 : f32 to vector<8x1xf32>
    %25 = arith.mulf %23, %24 : vector<8x1xf32>
    %26 = arith.subf %20, %25 : vector<8x1xf32>
    %27 = vector.broadcast %26 : vector<8x1xf32> to vector<8x128xf32>
    %28 = arith.addf %19, %27 : vector<8x128xf32>
    %c0_19 = arith.constant 0 : index
    %c0_20 = arith.constant 0 : index
    %29 = vector.load %arg8[%c0_19, %c0_20] : memref<8x128xf32, #tpu.memory_space<vmem>>, vector<8x128xf32>
    tpu.vector_store %arg8[%c0_19, %c0_20], %28 {strides = array<i32>} : memref<8x128xf32, #tpu.memory_space<vmem>>, vector<8x128xf32>,
    return
  }
  func.func @transform_0(%arg0: i32) -> (i32, i32) {
    %c0_i32 = arith.constant 0 : i32
    %c0_i32_0 = arith.constant 0 : i32
    return %arg0, %c0_i32 : i32, i32
  }
  func.func @transform_1(%arg0: i32) -> (i32, i32) {
    %c0_i32 = arith.constant 0 : i32
    %c0_i32_0 = arith.constant 0 : i32
    %c0_i32_1 = arith.constant 0 : i32
    return %c0_i32, %c0_i32_0 : i32, i32
  }
  func.func @transform_2(%arg0: i32) -> (i32, i32) {
    %c0_i32 = arith.constant 0 : i32
    %c0_i32_0 = arith.constant 0 : i32
    %c0_i32_1 = arith.constant 0 : i32
    return %c0_i32, %c0_i32_0 : i32, i32
  }
  func.func @transform_3(%arg0: i32) -> (i32, i32) {
    %c0_i32 = arith.constant 0 : i32
    %c0_i32_0 = arith.constant 0 : i32
    %c0_i32_1 = arith.constant 0 : i32
    return %c0_i32, %c0_i32_0 : i32, i32
  }
  func.func @transform_4(%arg0: i32) -> (i32, i32) {
    %c0_i32 = arith.constant 0 : i32
    %c0_i32_0 = arith.constant 0 : i32
    %c0_i32_1 = arith.constant 0 : i32
    return %c0_i32, %c0_i32_0 : i32, i32
  }
  func.func @transform_5(%arg0: i32) -> (i32, i32) {
    %c0_i32 = arith.constant 0 : i32
    %c0_i32_0 = arith.constant 0 : i32
    %c0_i32_1 = arith.constant 0 : i32
    return %c0_i32, %c0_i32_0 : i32, i32
  }
  func.func @transform_6(%arg0: i32) -> (i32, i32) {
    %c0_i32 = arith.constant 0 : i32
    %c0_i32_0 = arith.constant 0 : i32
    %c0_i32_1 = arith.constant 0 : i32
    return %c0_i32, %c0_i32_0 : i32, i32
  }
  func.func @transform_7(%arg0: i32) -> (i32, i32) {
    %c0_i32 = arith.constant 0 : i32
    %c0_i32_0 = arith.constant 0 : i32
    return %arg0, %c0_i32 : i32, i32
  }
}

</mosaic_0001>

<bundles_post_ra>
// kernel: tpu_custom_call.1
= control target key start
LH: loop header
LB: loop body
LE: loop exit
PB: predicated region body
PF: predicated region fallthrough
CT: control target
= control target key end

     0   :  { %12 = vsyncpa [#allocation3], 0  ;;  %s911_s0 = inlined_call_operand.hbm [shape: f32[8,128], index: 0, kind: input, shape index: {}]   ;;  %s912_s1 = inlined_call_operand.hbm [shape: f32[128,128], index: 1, kind: input, shape index: {}]   ;;  %s913_s2 = inlined_call_operand.vmem [shape: f32[1,128], index: 2, kind: input, shape index: {}]   ;;  %s914_s3 = inlined_call_operand.hbm [shape: f32[128,128], index: 3, kind: input, shape index: {}]   ;;  %s915_s4 = inlined_call_operand.vmem [shape: f32[1,128], index: 4, kind: input, shape index: {}]   ;;  %s916_s5 = inlined_call_operand.hbm [shape: f32[128,128], index: 5, kind: input, shape index: {}]   ;;  %s917_s6 = inlined_call_operand.vmem [shape: f32[1,128], index: 6, kind: input, shape index: {}]   ;;  %s918_s7 = inlined_call_operand.hbm [shape: f32[8,128], index: 7, kind: output, shape index: {}]  }
   0x1   :  { %13 = vsyncpa [#allocation6], 0 }
   0x2   :  { %14 = vsyncpa [#allocation9], 0 }
   0x3   :  { %15 = vsyncpa [#allocation4], 0  ;;  %s752_s24 = smov [#allocation5]   ;;  %s634_s28 = scalar_lea.hbm %s912_s1, 2048 }
   0x4   :  { %s31_s25 = sshll.u32 %s752_s24, 4  ;;  %p635_p0 = scmp.ne.s32.totalorder %s912_s1, %s634_s28  ;;  %s32_s25 = int_to_ptr.vmem [resolvable:$true] %s31_s25 }
   0x5   :  { %p638_p1 = scmp.lt.u32.totalorder %s634_s28, %s912_s1 }
   0x7   :  { %p640_p2 = pnand %p638_p1, %p635_p0 }
   0x9   :  { %643 = shalt.err (!%p640_p2)
}
   0xa   :  { %s644_s10 = scalar_lea.vmem %s32_s25, 2048  ;;  %p649_p4 = scmp.lt.s32.totalorder %s32_s25, %s32_s25 }
   0xb   :  { %p645_p3 = scmp.ne.s32.totalorder %s32_s25, %s644_s10  ;;  %p650_p5 = scmp.lt.s32.totalorder %s644_s10, %s644_s10 }
   0xd   :  { %p651_p6 = por %p650_p5, %p649_p4 }
   0xf   :  { %p652_p7 = pnand %p651_p6, %p645_p3 }
  0x11   :  { %655 = shalt.err (!%p652_p7)
}
  0x12   :  { %s753_s11 = smov 128   ;;  %s754_s12 = smov 8  }
  0x13   :  { %37 = dma.hbm_to_vmem [thread:$0]  %s912_s1, 2048, %s32_s25, [#allocation6], %s753_s11, %s753_s11, %s754_s12  }
  0x14   :  { %s755_s15 = smov [#allocation2]   ;;  %s756_s17 = smov [#allocation7]  }
  0x15   :  { %s22_s16 = sshll.u32 %s755_s15, 4  ;;  %s45_s18 = sshll.u32 %s756_s17, 4  ;;  %s23_s16 = int_to_ptr.vmem [resolvable:$true] %s22_s16  ;;  %s46_s18 = int_to_ptr.vmem [resolvable:$true] %s45_s18 }
  0x16   :  { %s656_s21 = scalar_lea.hbm %s911_s0, 128 }
  0x17   :  { %p657_p8 = scmp.ne.s32.totalorder %s911_s0, %s656_s21  ;;  %p660_p9 = scmp.lt.u32.totalorder %s656_s21, %s911_s0 }
  0x19   :  { %p662_p10 = pnand %p660_p9, %p657_p8 }
  0x1b   :  { %665 = shalt.err (!%p662_p10)
}
  0x1c   :  { %s666_s1 = scalar_lea.vmem %s23_s16, 128  ;;  %p671_p12 = scmp.lt.s32.totalorder %s23_s16, %s23_s16 }
  0x1d   :  { %p667_p11 = scmp.ne.s32.totalorder %s23_s16, %s666_s1  ;;  %p672_p13 = scmp.lt.s32.totalorder %s666_s1, %s666_s1 }
  0x1f   :  { %p673_p0 = por %p672_p13, %p671_p12 }
  0x21   :  { %p674_p1 = pnand %p673_p0, %p667_p11 }
  0x23   :  { %677 = shalt.err (!%p674_p1)
}
  0x24   :  { %25 = dma.hbm_to_vmem [thread:$0]  %s911_s0, 128, %s23_s16, [#allocation3]  }
  0x25   :  { %s678_s30 = scalar_lea.hbm %s914_s3, 2048 }
  0x26   :  { %p679_p2 = scmp.ne.s32.totalorder %s914_s3, %s678_s30  ;;  %p682_p3 = scmp.lt.u32.totalorder %s678_s30, %s914_s3 }
  0x28   :  { %p684_p4 = pnand %p682_p3, %p679_p2 }
  0x2a   :  { %687 = shalt.err (!%p684_p4)
}
  0x2b   :  { %s688_s14 = scalar_lea.vmem %s46_s18, 2048  ;;  %p693_p6 = scmp.lt.s32.totalorder %s46_s18, %s46_s18 }
  0x2c   :  { %p689_p5 = scmp.ne.s32.totalorder %s46_s18, %s688_s14  ;;  %p694_p7 = scmp.lt.s32.totalorder %s688_s14, %s688_s14 }
  0x2e   :  { %p695_p8 = por %p694_p7, %p693_p6 }
  0x30   :  { %p696_p9 = pnand %p695_p8, %p689_p5 }
  0x32   :  { %699 = shalt.err (!%p696_p9)
}
  0x33   :  { %51 = dma.hbm_to_vmem [thread:$0]  %s914_s3, 2048, %s46_s18, [#allocation6], %s753_s11, %s753_s11, %s754_s12  }
  0x34   :  { %s757_s16 = smov [#allocation8]   ;;  %s700_s21 = scalar_lea.hbm %s916_s5, 2048 }
  0x35   :  { %s59_s17 = sshll.u32 %s757_s16, 4  ;;  %p701_p10 = scmp.ne.s32.totalorder %s916_s5, %s700_s21  ;;  %s60_s17 = int_to_ptr.vmem [resolvable:$true] %s59_s17 }
  0x36   :  { %p704_p11 = scmp.lt.u32.totalorder %s700_s21, %s916_s5 }
  0x38   :  { %p706_p12 = pnand %p704_p11, %p701_p10 }
  0x3a   :  { %709 = shalt.err (!%p706_p12)
}
  0x3b   :  { %s710_s1 = scalar_lea.vmem %s60_s17, 2048  ;;  %p715_p0 = scmp.lt.s32.totalorder %s60_s17, %s60_s17 }
  0x3c   :  { %p711_p13 = scmp.ne.s32.totalorder %s60_s17, %s710_s1  ;;  %p716_p1 = scmp.lt.s32.totalorder %s710_s1, %s710_s1 }
  0x3e   :  { %p717_p2 = por %p716_p1, %p715_p0 }
  0x40   :  { %p718_p3 = pnand %p717_p2, %p711_p13 }
  0x42   :  { %721 = shalt.err (!%p718_p3)
}
  0x43   :  { %65 = dma.hbm_to_vmem [thread:$0]  %s916_s5, 2048, %s60_s17, [#allocation9], %s753_s11, %s753_s11, %s754_s12  }
  0x44   :  { %744 = dma.done.wait [#allocation3], 128  }
  0x45   :  { %745 = vsyncadd [#allocation3], 4294967168 }
  0x46   :  { %746 = dma.done.wait [#allocation6], 4096  }
  0x47   :  { %747 = vsyncadd [#allocation6], 4294963200 }
  0x48   :  { %748 = dma.done.wait [#allocation9], 2048  }
  0x49   :  { %749 = vsyncadd [#allocation9], 4294965248  ;;  %v758_v0 = vmov 0.0|0.0   ;;  %vm759_vm0 = vmmov 0   ;;  %v760_v1 = vmov 0.0   ;;  %v81_v2 = vld [vmem:[#allocation5] sm:$0xff] }
  0x4a   :  { %550 = vmatprep.subr.bf16.mxu0 %v758_v0  ;;  %477 = vmatprep.mubr.msk.f32.mxu0 %vm759_vm0, %v760_v1  ;;  %v82_v3 = vld [vmem:[#allocation5 + $0x8] sm:$0xff]  ;;  %v83_v4 = vld [vmem:[#allocation5 + $0x10] sm:$0xff]  ;;  %v84_v6 = vld [vmem:[#allocation5 + $0x18] sm:$0xff] }
  0x4b   :  { %574 = vmatprep.subr.bf16.mxu1 %v758_v0  ;;  %512 = vmatprep.mubr.msk.f32.mxu1 %vm759_vm0, %v760_v1  ;;  %v551_v5 = vpack.c.bf16 %v82_v3, %v81_v2  ;;  %v554_v7 = vpack.c.bf16 %v84_v6, %v83_v4  ;;  %v85_v8 = vld [vmem:[#allocation5 + $0x20] sm:$0xff]  ;;  %v86_v9 = vld [vmem:[#allocation5 + $0x28] sm:$0xff]  ;;  %v177_v12 = vld [vmem:[#allocation7 + $0x10] sm:$0xff] }
  0x4c   :  { %v175_v10 = vld [vmem:[#allocation7] sm:$0xff]  ;;  %v176_v11 = vld [vmem:[#allocation7 + $0x8] sm:$0xff]  ;;  %v178_v13 = vld [vmem:[#allocation7 + $0x18] sm:$0xff]  ;;  %v557_v14 = vpack.c.bf16 %v86_v9, %v85_v8 }
  0x4d   :  { %552 = vmatpush3.bf16.msra.mxu0 %v551_v5  ;;  %v575_v15 = vpack.c.bf16 %v176_v11, %v175_v10  ;;  %v87_v16 = vld [vmem:[#allocation5 + $0x30] sm:$0xff]  ;;  %v88_v17 = vld [vmem:[#allocation5 + $0x38] sm:$0xff]  ;;  %v578_v18 = vpack.c.bf16 %v178_v13, %v177_v12  ;;  %v179_v19 = vld [vmem:[#allocation7 + $0x20] sm:$0xff] }
  0x4e   :  { %553 = vmatprep.subr.bf16.mxu0 %v758_v0  ;;  %v180_v20 = vld [vmem:[#allocation7 + $0x28] sm:$0xff]  ;;  %v560_v21 = vpack.c.bf16 %v88_v17, %v87_v16  ;;  %v89_v22 = vld [vmem:[#allocation5 + $0x40] sm:$0xff]  ;;  %v181_v25 = vld [vmem:[#allocation7 + $0x30] sm:$0xff] }
  0x4f   :  { %576 = vmatpush3.bf16.msra.mxu1 %v575_v15  ;;  %v90_v23 = vld [vmem:[#allocation5 + $0x48] sm:$0xff]  ;;  %v581_v24 = vpack.c.bf16 %v180_v20, %v179_v19  ;;  %v182_v26 = vld [vmem:[#allocation7 + $0x38] sm:$0xff]  ;;  %v91_v28 = vld [vmem:[#allocation5 + $0x50] sm:$0xff] }
  0x50   :  { %577 = vmatprep.subr.bf16.mxu1 %v758_v0  ;;  %v563_v27 = vpack.c.bf16 %v90_v23, %v89_v22  ;;  %v92_v29 = vld [vmem:[#allocation5 + $0x58] sm:$0xff]  ;;  %v584_v30 = vpack.c.bf16 %v182_v26, %v181_v25  ;;  %v183_v31 = vld [vmem:[#allocation7 + $0x40] sm:$0xff]  ;;  %v184_v32 = vld [vmem:[#allocation7 + $0x48] sm:$0xff]  ;;  %v761_v25 = vmov 0  }
  0x51   :  { %555 = vmatpush3.bf16.msra.mxu0 %v554_v7  ;;  %v566_v33 = vpack.c.bf16 %v92_v29, %v91_v28  ;;  %v93_v34 = vld [vmem:[#allocation5 + $0x60] sm:$0xff]  ;;  %v94_v35 = vld [vmem:[#allocation5 + $0x68] sm:$0xff]  ;;  %v587_v36 = vpack.c.bf16 %v184_v32, %v183_v31  ;;  %v185_v37 = vld [vmem:[#allocation7 + $0x50] sm:$0xff]  ;;  %633 = vset.pattern.permute.xlu0 %v761_v25 }
  0x52   :  { %556 = vmatprep.subr.bf16.mxu0 %v758_v0  ;;  %v186_v38 = vld [vmem:[#allocation7 + $0x58] sm:$0xff]  ;;  %v569_v39 = vpack.c.bf16 %v94_v35, %v93_v34  ;;  %v95_v40 = vld [vmem:[#allocation5 + $0x70] sm:$0xff]  ;;  %v187_v43 = vld [vmem:[#allocation7 + $0x60] sm:$0xff] }
  0x53   :  { %579 = vmatpush3.bf16.msra.mxu1 %v578_v18  ;;  %v96_v41 = vld [vmem:[#allocation5 + $0x78] sm:$0xff]  ;;  %v590_v42 = vpack.c.bf16 %v186_v38, %v185_v37  ;;  %v188_v44 = vld [vmem:[#allocation7 + $0x68] sm:$0xff]  ;;  %v189_v48 = vld [vmem:[#allocation7 + $0x70] sm:$0xff] }
  0x54   :  { %580 = vmatprep.subr.bf16.mxu1 %v758_v0  ;;  %v572_v45 = vpack.c.bf16 %v96_v41, %v95_v40  ;;  %v593_v46 = vpack.c.bf16 %v188_v44, %v187_v43  ;;  %v80_v47 = vld [vmem:[#allocation2] sm:$0xff]  ;;  %v269_v51 = vld [vmem:[#allocation8] sm:$0xff]  ;;  %v270_v52 = vld [vmem:[#allocation8 + $0x8] sm:$0xff] }
  0x55   :  { %558 = vmatpush3.bf16.msra.mxu0 %v557_v14  ;;  %v190_v49 = vld [vmem:[#allocation7 + $0x78] sm:$0xff]  ;;  %v271_v53 = vld [vmem:[#allocation8 + $0x10] sm:$0xff]  ;;  %v599_v54 = vpack.c.bf16 %v270_v52, %v269_v51  ;;  %v273_v57 = vld [vmem:[#allocation8 + $0x20] sm:$0xff] }
  0x56   :  { %559 = vmatprep.subr.bf16.mxu0 %v758_v0  ;;  %v596_v50 = vpack.c.bf16 %v190_v49, %v189_v48  ;;  %v272_v55 = vld [vmem:[#allocation8 + $0x18] sm:$0xff]  ;;  %v274_v58 = vld [vmem:[#allocation8 + $0x28] sm:$0xff]  ;;  %v275_v60 = vld [vmem:[#allocation8 + $0x30] sm:$0xff] }
  0x57   :  { %582 = vmatpush3.bf16.msra.mxu1 %v581_v24  ;;  %v602_v56 = vpack.c.bf16 %v272_v55, %v271_v53  ;;  %v605_v59 = vpack.c.bf16 %v274_v58, %v273_v57  ;;  %v276_v61 = vld [vmem:[#allocation8 + $0x38] sm:$0xff]  ;;  %v277_v63 = vld [vmem:[#allocation8 + $0x40] sm:$0xff]  ;;  %v279_v3 = vld [vmem:[#allocation8 + $0x50] sm:$0xff] }
  0x58   :  { %583 = vmatprep.subr.bf16.mxu1 %v758_v0  ;;  %v608_v62 = vpack.c.bf16 %v276_v61, %v275_v60  ;;  %v280_v4 = vld [vmem:[#allocation8 + $0x58] sm:$0xff]  ;;  %v281_v6 = vld [vmem:[#allocation8 + $0x60] sm:$0xff]  ;;  %v282_v7 = vld [vmem:[#allocation8 + $0x68] sm:$0xff] }
  0x59   :  { %561 = vmatpush3.bf16.msra.mxu0 %v560_v21  ;;  %v614_v5 = vpack.c.bf16 %v280_v4, %v279_v3  ;;  %v617_v8 = vpack.c.bf16 %v282_v7, %v281_v6  ;;  %v391_v9 = vld [vmem:[%s913_s2] ss:$0 sm:$0xff]  ;;  %v283_v14 = vld [vmem:[#allocation8 + $0x70] sm:$0xff] }
  0x5a   :  { %562 = vmatprep.subr.bf16.mxu0 %v758_v0  ;;  %v284_v15 = vld [vmem:[#allocation8 + $0x78] sm:$0xff] }
  0x5b   :  { %585 = vmatpush3.bf16.msra.mxu1 %v584_v30  ;;  %v620_v16 = vpack.c.bf16 %v284_v15, %v283_v14  ;;  %v392_v17 = vld [vmem:[%s915_s4] ss:$0 sm:$0xff]  ;;  %s762_s4 = smov [#allocation10]  }
  0x5c   :  { %586 = vmatprep.subr.bf16.mxu1 %v758_v0  ;;  %v393_v21 = vld [vmem:[%s917_s6] ss:$0 sm:$0xff]  ;;  %s380_s28 = sshll.u32 %s762_s4, 4  ;;  %s381_s28 = int_to_ptr.vmem [resolvable:$true] %s380_s28 }
  0x5d   :  { %564 = vmatpush3.bf16.msra.mxu0 %v563_v27  ;;  %s722_s29 = scalar_lea.vmem %s381_s28, 128  ;;  %p727_p5 = scmp.lt.s32.totalorder %s381_s28, %s381_s28 }
  0x5e   :  { %565 = vmatprep.subr.bf16.mxu0 %v758_v0  ;;  %p723_p4 = scmp.ne.s32.totalorder %s381_s28, %s722_s29  ;;  %p728_p6 = scmp.lt.s32.totalorder %s722_s29, %s722_s29 }
  0x5f   :  { %588 = vmatpush3.bf16.msra.mxu1 %v587_v36 }
  0x60   :  { %589 = vmatprep.subr.bf16.mxu1 %v758_v0  ;;  %p729_p7 = por %p728_p6, %p727_p5 }
  0x61   :  { %567 = vmatpush3.bf16.msra.mxu0 %v566_v33 }
  0x62   :  { %568 = vmatprep.subr.bf16.mxu0 %v758_v0  ;;  %p730_p8 = pnand %p729_p7, %p723_p4 }
  0x63   :  { %591 = vmatpush3.bf16.msra.mxu1 %v590_v42 }
  0x64   :  { %592 = vmatprep.subr.bf16.mxu1 %v758_v0 }
  0x65   :  { %570 = vmatpush3.bf16.msra.mxu0 %v569_v39 }
  0x66   :  { %571 = vmatprep.subr.bf16.mxu0 %v758_v0 }
  0x67   :  { %594 = vmatpush3.bf16.msra.mxu1 %v593_v46 }
  0x68   :  { %595 = vmatprep.subr.bf16.mxu1 %v758_v0 }
  0x69   :  { %573 = vmatpush3.bf16.msra.mxu0 %v572_v45 }
  0x6a   :  { %598 = vmatprep.subr.bf16.mxu0 %v758_v0 }
  0x6b   :  { %597 = vmatpush3.bf16.msra.mxu1 %v596_v50 }
  0x6c   :  { %478 = vmatmul.mubr.f32.vlgmr.msra.gmra.mrb[0].mxu0 %v80_v47 }
  0x6d   :  { %547 = vmatprep.mubr.msk.f32.mxu0 %vm759_vm0, %v760_v1  ;;  %600 = vmatpush3.bf16.msra.mxu0 %v599_v54  ;;  %v278_v1 = vld [vmem:[#allocation8 + $0x48] sm:$0xff] }
  0x6e   :  { %601 = vmatprep.subr.bf16.mxu0 %v758_v0  ;;  %v611_v2 = vpack.c.bf16 %v278_v1, %v277_v63 }
  0x71   :  { %603 = vmatpush3.bf16.msra.mxu0 %v602_v56 }
  0x72   :  { %604 = vmatprep.subr.bf16.mxu0 %v758_v0 }
  0x75   :  { %606 = vmatpush3.bf16.msra.mxu0 %v605_v59 }
  0x76   :  { %607 = vmatprep.subr.bf16.mxu0 %v758_v0 }
  0x79   :  { %609 = vmatpush3.bf16.msra.mxu0 %v608_v62 }
  0x7a   :  { %610 = vmatprep.subr.bf16.mxu0 %v758_v0 }
  0x7d   :  { %612 = vmatpush3.bf16.msra.mxu0 %v611_v2 }
  0x7e   :  { %613 = vmatprep.subr.bf16.mxu0 %v758_v0 }
  0x81   :  { %615 = vmatpush3.bf16.msra.mxu0 %v614_v5 }
  0x82   :  { %616 = vmatprep.subr.bf16.mxu0 %v758_v0 }
  0x85   :  { %618 = vmatpush3.bf16.msra.mxu0 %v617_v8 }
  0x86   :  { %619 = vmatprep.subr.bf16.mxu0 %v758_v0 }
  0x89   :  { %621 = vmatpush3.bf16.msra.mxu0 %v620_v16 }
 0x13f   :  { %v170_v10 = vpop.f32.mrb[0].mxu0 }
 0x140   :  { %v171_v11 = vadd.f32 %v391_v9, %v170_v10  ;;  %v479_v12 = vpop.f32.mrb[1].mxu0 }
 0x142   :  { %v174_v13 = vmax.f32 %v171_v11, 0.0 }
 0x144   :  { %513 = vmatmul.mubr.f32.vlgmr.msra.gmra.mrb[0].mxu1 %v174_v13 }
 0x217   :  { %v264_v18 = vpop.f32.mrb[0].mxu1 }
 0x218   :  { %v265_v19 = vadd.f32 %v392_v17, %v264_v18  ;;  %v514_v0 = vpop.f32.mrb[1].mxu1 }
 0x21a   :  { %v268_v20 = vmax.f32 %v265_v19, 0.0 }
 0x21c   :  { %548 = vmatmul.mubr.f32.vlgmr.msra.gmra.mrb[2].mxu0 %v268_v20 }
 0x2ef   :  { %v358_v22 = vpop.f32.mrb[2].mxu0 }
 0x2f0   :  { %v359_v23 = vadd.f32 %v393_v21, %v358_v22  ;;  %v549_v24 = vpop.f32.mrb[3].mxu0 }
 0x2f2   :  { %362 = vadd.xlane.f32.xlu0 %v359_v23 }
 0x37f   :  { %v363_v26 = vpop.xlane.xlu0 %362 }
 0x380   :  { %v364_v27 = vsub.f32 %v363_v26, %v359_v23 }
 0x382   :  { %v365_v28 = vmul.f32 0.25, %v364_v27 }
 0x384   :  { %v366_v29 = vsub.f32 %v359_v23, %v365_v28 }
 0x386   :  { %369 = vperm.xlu0 %633, %v366_v29  }
 0x405   :  { %v370_v30 = vpop.permute.xlu0 %369 }
 0x406   :  { %v372_v31 = vadd.f32 %v370_v30, %v359_v23 }
 0x408   :  { %373 = vst [vmem:[#allocation10] sm:$0xff] %v372_v31 }
 0x409   :  { %733 = shalt.err (!%p730_p8)
}
 0x40a   :  { %s734_s8 = scalar_lea.hbm %s918_s7, 128 }
 0x40b   :  { %p735_p9 = scmp.ne.s32.totalorder %s918_s7, %s734_s8  ;;  %p738_p10 = scmp.lt.u32.totalorder %s734_s8, %s918_s7 }
 0x40d   :  { %p740_p11 = pnand %p738_p10, %p735_p9 }
 0x40f   :  { %743 = shalt.err (!%p740_p11)
}
 0x410   :  { %383 = dma.vmem_to_hbm [thread:$0]  %s381_s28, 128, %s918_s7, [#allocation4]  }
 0x411   :  { %750 = dma.done.wait [#allocation4], 128  }
 0x412   :  { %751 = vsyncadd [#allocation4], 4294967168 }
 0x413   :  { %387 = vsyncpa [#allocation3], 1 }
 0x414   :  { %388 = vsyncpa [#allocation6], 1 }
 0x415   :  { %389 = vsyncpa [#allocation9], 1 }
 0x416   :  { %390 = vsyncpa [#allocation4], 1 }

</bundles_post_ra>
